<compile_context>
chip_gen: v7x
topology: tpu7x:2x2x1
jax: 0.10.0
libtpu: 0.0.40
codegen_flags: <defaults>
</compile_context>

<pallas_src>
import functools

import jax
import jax.numpy as jnp
from jax.experimental import pallas as pl
from jax.experimental.pallas import tpu as pltpu


def _feature_kernel(x_ref, w_ref, b_ref, o_ref, *, seq_norm, eps):
    # x_ref: (Bblk, T, F) f32 ; w_ref: (F, D) bf16 ; b_ref: (1, D) f32
    # o_ref: (Bblk, T, D) out_dtype -- doubles as the accumulator.
    bblk, t, _ = x_ref.shape

    # Per-batch-row 2-D matmuls (static first-axis slices -> no in-kernel
    # reshape copies).  The f32->bf16 cast of x happens here on the VPU.
    for b in range(bblk):
        xb = x_ref[b].astype(w_ref.dtype)                       # (T, F) bf16
        fb = jnp.dot(xb, w_ref[...],
                     preferred_element_type=jnp.float32)        # (T, D) f32
        o_ref[b] = (fb + b_ref[...]).astype(o_ref.dtype)

    if seq_norm:
        # torch semantics: mean / unbiased var over dim=1 (time), divide by T-1.
        # (With the default f32 out_dtype this round-trip through o_ref is
        # exact; it avoids keeping extra full-block f32 temporaries alive.)
        feat = o_ref[...].astype(jnp.float32)                   # (Bblk, T, D)
        mean = jnp.mean(feat, axis=1, keepdims=True)
        diff = feat - mean
        var = jnp.sum(diff * diff, axis=1, keepdims=True) / (t - 1)
        o_ref[...] = (diff * jax.lax.rsqrt(var + eps)).astype(o_ref.dtype)


def _padded_tile_bytes(shape, dtype):
    """VMEM footprint of one block: last dim padded to 128 lanes,
    second-to-last dim padded to 8 sublanes."""
    shape = tuple(shape)
    if len(shape) == 1:
        shape = (1,) + shape
    *lead, s, l = shape
    s_p = -(-s // 8) * 8
    l_p = -(-l // 128) * 128
    n = 1
    for d in lead:
        n *= int(d)
    return n * s_p * l_p * jnp.dtype(dtype).itemsize


def _tpu_vmem_and_cores():
    """(physical VMEM bytes, TensorCores per chip) with conservative fallbacks."""
    vmem = None
    try:
        vmem = int(pltpu.get_tpu_info().vmem_capacity_bytes)
    except Exception:
        vmem = None
    cores = 1
    try:
        kind = jax.devices()[0].device_kind.lower()
        if "7" in kind:                      # v7x: 2 TCs, 64 MiB VMEM per TC
            cores = 2
            if vmem is None:
                vmem = 64 << 20
    except Exception:
        pass
    if vmem is None:
        vmem = 64 << 20                      # conservative default (v7x size)
    return vmem, cores


def _block_vmem_bytes(bblk, T, F, D, out_dtype):
    """VMEM cost of one grid step: double-buffered x and out blocks plus the
    in-kernel temporaries (bf16 x copy, f32 feat/diff values that may spill)."""
    x_blk = _padded_tile_bytes((bblk, T, F), jnp.float32)
    o_blk = _padded_tile_bytes((bblk, T, D), out_dtype)
    f32_blk = _padded_tile_bytes((bblk, T, D), jnp.float32)
    return 2 * x_blk + 2 * o_blk + (x_blk // 2) + 2 * f32_blk


def _choose_bblk(B, T, F, D, out_dtype, budget_bytes, min_grid_steps):
    """Largest divisor of B that keeps >= min_grid_steps grid steps (only >1 on
    dual-TC chips) and fits the generation-aware VMEM budget."""
    best = 1
    min_steps = min(min_grid_steps, B)
    for bb in range(1, B + 1):
        if B % bb:
            continue
        if B // bb < min_steps:
            continue
        if _block_vmem_bytes(bb, T, F, D, out_dtype) <= budget_bytes:
            best = bb
    return best


def feature_module_forward(x, w_enc, b_enc, w_gar, b_gar, *,
                           get_encoded=False, seq_norm=True, eps=1e-8,
                           compute_dtype=jnp.bfloat16, out_dtype=jnp.float32):
    """x: (B, T, F) pre-framed audio (float32).  Returns (B, T, Dout) out_dtype."""
    B, T, F = x.shape
    if seq_norm and T < 2:
        raise ValueError("seq_norm requires T >= 2 (unbiased variance divides by T-1)")

    # Algebraic fusion of the two stand-in linears (once, outside the kernel).
    if get_encoded:
        w, b = w_enc, b_enc
    else:
        w = w_enc @ w_gar
        b = b_enc @ w_gar + b_gar
    D = w.shape[1]

    w_c = w.astype(compute_dtype)                       # small: bf16 MXU operand
    b_f32 = b.astype(jnp.float32).reshape(1, D)         # bias add stays f32
    x_f32 = x.astype(jnp.float32)                       # no wrapper-side bf16 cast

    vmem_cap, n_cores = _tpu_vmem_and_cores()
    weight_bytes = (2 * _padded_tile_bytes((F, D), compute_dtype)
                    + _padded_tile_bytes((1, D), jnp.float32))
    budget = max(vmem_cap // 2 - weight_bytes, 1 << 20)
    Bblk = _choose_bblk(B, T, F, D, out_dtype, budget, min_grid_steps=n_cores)
    grid_len = B // Bblk

    total_bytes = _block_vmem_bytes(Bblk, T, F, D, out_dtype) + weight_bytes
    # Always set the scoped VMEM limit from the real accounting; cap below
    # physical capacity (on v7x this stays under the 64 MiB per-TC VMEM).
    vmem_limit = int(min(max(total_bytes + (4 << 20), 16 << 20),
                         int(vmem_cap * 0.85)))

    kernel = functools.partial(_feature_kernel, seq_norm=seq_norm, eps=eps)

    out = pl.pallas_call(
        kernel,
        out_shape=jax.ShapeDtypeStruct((B, T, D), out_dtype),
        grid_spec=pltpu.PrefetchScalarGridSpec(
            num_scalar_prefetch=0,
            grid=(grid_len,),
            in_specs=[
                pl.BlockSpec((Bblk, T, F), lambda i: (i, 0, 0)),
                pl.BlockSpec((F, D), lambda i: (0, 0)),
                pl.BlockSpec((1, D), lambda i: (0, 0)),
            ],
            out_specs=pl.BlockSpec((Bblk, T, D), lambda i: (i, 0, 0)),
        ),
        compiler_params=pltpu.CompilerParams(
            dimension_semantics=("parallel",),
            vmem_limit_bytes=vmem_limit),
    )(x_f32, w_c, b_f32)

    return out


def _reference(x, w_enc, b_enc, w_gar, b_gar, *, get_encoded, seq_norm, eps,
               compute_dtype=jnp.bfloat16):
    """Matched-precision reference (same fused weights + bf16 matmul operands)."""
    if get_encoded:
        w, b = w_enc, b_enc
    else:
        w = w_enc @ w_gar
        b = b_enc @ w_gar + b_gar
    feat = jnp.einsum("btf,fd->btd", x.astype(compute_dtype), w.astype(compute_dtype),
                      preferred_element_type=jnp.float32) + b.astype(jnp.float32)[None]
    if seq_norm:
        T = feat.shape[1]
        mean = jnp.mean(feat, axis=1, keepdims=True)
        var = jnp.sum((feat - mean) ** 2, axis=1, keepdims=True) / (T - 1)
        feat = (feat - mean) * jax.lax.rsqrt(var + eps)
    return feat


def _reference_f32(x, w_enc, b_enc, w_gar, b_gar, *, get_encoded, seq_norm, eps):
    """Pure-f32 two-matmul reference (original module semantics)."""
    enc = jnp.einsum("btf,fd->btd", x, w_enc) + b_enc[None]
    feat = enc if get_encoded else jnp.einsum("btd,de->bte", enc, w_gar) + b_gar[None]
    if seq_norm:
        T = feat.shape[1]
        mean = jnp.mean(feat, axis=1, keepdims=True)
        var = jnp.sum((feat - mean) ** 2, axis=1, keepdims=True) / (T - 1)
        feat = (feat - mean) / jnp.sqrt(var + eps)
    return feat


if __name__ == "__main__":
    B, L, F = 8, 128, 16            # raw audio length L, frame/stride F
    T = L // F                      # 8 feature frames
    Denc, Dgar = 32, 32             # hiddenEncoder, hiddenGar

    key = jax.random.PRNGKey(0)
    k_x, k_we, k_be, k_wg, k_bg = jax.random.split(key, 5)

    audio = jax.random.normal(k_x, (B, 1, L), dtype=jnp.float32)   # (B, 1, L) NCW
    x = audio.reshape(B, T, F)                                     # pre-framed

    w_enc = jax.random.normal(k_we, (F, Denc), dtype=jnp.float32) * 0.1
    b_enc = jax.random.normal(k_be, (1, Denc), dtype=jnp.float32) * 0.01
    w_gar = jax.random.normal(k_wg, (Denc, Dgar), dtype=jnp.float32) * 0.1
    b_gar = jax.random.normal(k_bg, (1, Dgar), dtype=jnp.float32) * 0.01

    # Main path (get_encoded=False, seq_norm=True).
    out = feature_module_forward(x, w_enc, b_enc, w_gar, b_gar,
                                 get_encoded=False, seq_norm=True)
    out = jax.block_until_ready(out)
    assert out.shape == (B, T, Dgar)
    assert out.dtype == jnp.float32

    ref = _reference(x, w_enc, b_enc, w_gar, b_gar,
                     get_encoded=False, seq_norm=True, eps=1e-8)
    assert jnp.allclose(out, ref, atol=2e-3, rtol=2e-3), "mismatch vs matched-precision reference"

    ref32 = _reference_f32(x, w_enc, b_enc, w_gar, b_gar,
                           get_encoded=False, seq_norm=True, eps=1e-8)
    assert jnp.max(jnp.abs(out - ref32)) < 0.1, "mismatch vs f32 reference (semantics)"

    # Encoded-only path (get_encoded=True).
    out_enc = feature_module_forward(x, w_enc, b_enc, w_gar, b_gar,
                                     get_encoded=True, seq_norm=True)
    out_enc = jax.block_until_ready(out_enc)
    ref_enc = _reference(x, w_enc, b_enc, w_gar, b_gar,
                         get_encoded=True, seq_norm=True, eps=1e-8)
    assert out_enc.shape == (B, T, Denc)
    assert jnp.allclose(out_enc, ref_enc, atol=2e-3, rtol=2e-3), "mismatch (get_encoded)"

    # No-seq-norm path.
    out_raw = feature_module_forward(x, w_enc, b_enc, w_gar, b_gar,
                                     get_encoded=False, seq_norm=False)
    out_raw = jax.block_until_ready(out_raw)
    ref_raw = _reference(x, w_enc, b_enc, w_gar, b_gar,
                         get_encoded=False, seq_norm=False, eps=1e-8)
    assert jnp.allclose(out_raw, ref_raw, atol=2e-3, rtol=2e-3), "mismatch (no seq_norm)"

    print("KERNEL_OK")
</pallas_src>

<mosaic_0001>
module attributes {stable_mosaic.version = 11 : i64} {
  func.func @_feature_kernel(%arg0: i32, %arg1: memref<8x8x16xf32, #tpu.memory_space<vmem>>, %arg2: memref<16x32xbf16, #tpu.memory_space<vmem>>, %arg3: memref<1x32xf32, #tpu.memory_space<vmem>>, %arg4: memref<8x8x32xf32, #tpu.memory_space<vmem>>) attributes {dimension_semantics = [#tpu.dimension_semantics<parallel>], iteration_bounds = array<i64: 1>, scalar_prefetch = 0 : i64, scratch_operands = 0 : i64, tpu.core_type = #tpu.core_type<tc>, window_params = [{transform_indices = @transform_0, window_bounds = array<i64: 8, 8, 16>}, {pipeline_mode = #tpu.pipeline_mode<synchronous>, transform_indices = @transform_1, window_bounds = array<i64: 16, 32>}, {pipeline_mode = #tpu.pipeline_mode<synchronous>, transform_indices = @transform_2, window_bounds = array<i64: 1, 32>}, {transform_indices = @transform_3, window_bounds = array<i64: 8, 8, 32>}]} {
    %c0 = arith.constant 0 : index
    %c0_0 = arith.constant 0 : index
    %c0_1 = arith.constant 0 : index
    %0 = vector.load %arg1[%c0, %c0_0, %c0_1] : memref<8x8x16xf32, #tpu.memory_space<vmem>>, vector<1x8x16xf32>
    %1 = vector.shape_cast %0 : vector<1x8x16xf32> to vector<8x16xf32>
    %2 = arith.truncf %1 : vector<8x16xf32> to vector<8x16xbf16>
    %c0_2 = arith.constant 0 : index
    %c0_3 = arith.constant 0 : index
    %3 = vector.load %arg2[%c0_2, %c0_3] : memref<16x32xbf16, #tpu.memory_space<vmem>>, vector<16x32xbf16>
    %cst = arith.constant dense<0.000000e+00> : vector<8x32xf32>
    %4 = tpu.matmul %2, %3, %cst {dimension_numbers = #tpu.dot_dimension_numbers<[1], [0], [0], [1], [0, 0, 1, 1], [], []>} : vector<8x16xbf16>, vector<16x32xbf16>, vector<8x32xf32> -> vector<8x32xf32>
    %c0_4 = arith.constant 0 : index
    %c0_5 = arith.constant 0 : index
    %5 = vector.load %arg3[%c0_4, %c0_5] : memref<1x32xf32, #tpu.memory_space<vmem>>, vector<1x32xf32>
    %6 = vector.broadcast %5 : vector<1x32xf32> to vector<8x32xf32>
    %7 = arith.addf %4, %6 : vector<8x32xf32>
    %c0_6 = arith.constant 0 : index
    %c0_7 = arith.constant 0 : index
    %c0_8 = arith.constant 0 : index
    %8 = vector.load %arg4[%c0_6, %c0_7, %c0_8] : memref<8x8x32xf32, #tpu.memory_space<vmem>>, vector<1x8x32xf32>
    %9 = vector.shape_cast %8 : vector<1x8x32xf32> to vector<8x32xf32>
    %10 = vector.shape_cast %7 : vector<8x32xf32> to vector<1x8x32xf32>
    tpu.vector_store %arg4[%c0_6, %c0_7, %c0_8], %10 {strides = array<i32>} : memref<8x8x32xf32, #tpu.memory_space<vmem>>, vector<1x8x32xf32>,
    %c1 = arith.constant 1 : index
    %c0_9 = arith.constant 0 : index
    %c0_10 = arith.constant 0 : index
    %11 = vector.load %arg1[%c1, %c0_9, %c0_10] : memref<8x8x16xf32, #tpu.memory_space<vmem>>, vector<1x8x16xf32>
    %12 = vector.shape_cast %11 : vector<1x8x16xf32> to vector<8x16xf32>
    %13 = arith.truncf %12 : vector<8x16xf32> to vector<8x16xbf16>
    %c0_11 = arith.constant 0 : index
    %c0_12 = arith.constant 0 : index
    %14 = vector.load %arg2[%c0_11, %c0_12] : memref<16x32xbf16, #tpu.memory_space<vmem>>, vector<16x32xbf16>
    %cst_13 = arith.constant dense<0.000000e+00> : vector<8x32xf32>
    %15 = tpu.matmul %13, %14, %cst_13 {dimension_numbers = #tpu.dot_dimension_numbers<[1], [0], [0], [1], [0, 0, 1, 1], [], []>} : vector<8x16xbf16>, vector<16x32xbf16>, vector<8x32xf32> -> vector<8x32xf32>
    %c0_14 = arith.constant 0 : index
    %c0_15 = arith.constant 0 : index
    %16 = vector.load %arg3[%c0_14, %c0_15] : memref<1x32xf32, #tpu.memory_space<vmem>>, vector<1x32xf32>
    %17 = vector.broadcast %16 : vector<1x32xf32> to vector<8x32xf32>
    %18 = arith.addf %15, %17 : vector<8x32xf32>
    %c1_16 = arith.constant 1 : index
    %c0_17 = arith.constant 0 : index
    %c0_18 = arith.constant 0 : index
    %19 = vector.load %arg4[%c1_16, %c0_17, %c0_18] : memref<8x8x32xf32, #tpu.memory_space<vmem>>, vector<1x8x32xf32>
    %20 = vector.shape_cast %19 : vector<1x8x32xf32> to vector<8x32xf32>
    %21 = vector.shape_cast %18 : vector<8x32xf32> to vector<1x8x32xf32>
    tpu.vector_store %arg4[%c1_16, %c0_17, %c0_18], %21 {strides = array<i32>} : memref<8x8x32xf32, #tpu.memory_space<vmem>>, vector<1x8x32xf32>,
    %c2 = arith.constant 2 : index
    %c0_19 = arith.constant 0 : index
    %c0_20 = arith.constant 0 : index
    %22 = vector.load %arg1[%c2, %c0_19, %c0_20] : memref<8x8x16xf32, #tpu.memory_space<vmem>>, vector<1x8x16xf32>
    %23 = vector.shape_cast %22 : vector<1x8x16xf32> to vector<8x16xf32>
    %24 = arith.truncf %23 : vector<8x16xf32> to vector<8x16xbf16>
    %c0_21 = arith.constant 0 : index
    %c0_22 = arith.constant 0 : index
    %25 = vector.load %arg2[%c0_21, %c0_22] : memref<16x32xbf16, #tpu.memory_space<vmem>>, vector<16x32xbf16>
    %cst_23 = arith.constant dense<0.000000e+00> : vector<8x32xf32>
    %26 = tpu.matmul %24, %25, %cst_23 {dimension_numbers = #tpu.dot_dimension_numbers<[1], [0], [0], [1], [0, 0, 1, 1], [], []>} : vector<8x16xbf16>, vector<16x32xbf16>, vector<8x32xf32> -> vector<8x32xf32>
    %c0_24 = arith.constant 0 : index
    %c0_25 = arith.constant 0 : index
    %27 = vector.load %arg3[%c0_24, %c0_25] : memref<1x32xf32, #tpu.memory_space<vmem>>, vector<1x32xf32>
    %28 = vector.broadcast %27 : vector<1x32xf32> to vector<8x32xf32>
    %29 = arith.addf %26, %28 : vector<8x32xf32>
    %c2_26 = arith.constant 2 : index
    %c0_27 = arith.constant 0 : index
    %c0_28 = arith.constant 0 : index
    %30 = vector.load %arg4[%c2_26, %c0_27, %c0_28] : memref<8x8x32xf32, #tpu.memory_space<vmem>>, vector<1x8x32xf32>
    %31 = vector.shape_cast %30 : vector<1x8x32xf32> to vector<8x32xf32>
    %32 = vector.shape_cast %29 : vector<8x32xf32> to vector<1x8x32xf32>
    tpu.vector_store %arg4[%c2_26, %c0_27, %c0_28], %32 {strides = array<i32>} : memref<8x8x32xf32, #tpu.memory_space<vmem>>, vector<1x8x32xf32>,
    %c3 = arith.constant 3 : index
    %c0_29 = arith.constant 0 : index
    %c0_30 = arith.constant 0 : index
    %33 = vector.load %arg1[%c3, %c0_29, %c0_30] : memref<8x8x16xf32, #tpu.memory_space<vmem>>, vector<1x8x16xf32>
    %34 = vector.shape_cast %33 : vector<1x8x16xf32> to vector<8x16xf32>
    %35 = arith.truncf %34 : vector<8x16xf32> to vector<8x16xbf16>
    %c0_31 = arith.constant 0 : index
    %c0_32 = arith.constant 0 : index
    %36 = vector.load %arg2[%c0_31, %c0_32] : memref<16x32xbf16, #tpu.memory_space<vmem>>, vector<16x32xbf16>
    %cst_33 = arith.constant dense<0.000000e+00> : vector<8x32xf32>
    %37 = tpu.matmul %35, %36, %cst_33 {dimension_numbers = #tpu.dot_dimension_numbers<[1], [0], [0], [1], [0, 0, 1, 1], [], []>} : vector<8x16xbf16>, vector<16x32xbf16>, vector<8x32xf32> -> vector<8x32xf32>
    %c0_34 = arith.constant 0 : index
    %c0_35 = arith.constant 0 : index
    %38 = vector.load %arg3[%c0_34, %c0_35] : memref<1x32xf32, #tpu.memory_space<vmem>>, vector<1x32xf32>
    %39 = vector.broadcast %38 : vector<1x32xf32> to vector<8x32xf32>
    %40 = arith.addf %37, %39 : vector<8x32xf32>
    %c3_36 = arith.constant 3 : index
    %c0_37 = arith.constant 0 : index
    %c0_38 = arith.constant 0 : index
    %41 = vector.load %arg4[%c3_36, %c0_37, %c0_38] : memref<8x8x32xf32, #tpu.memory_space<vmem>>, vector<1x8x32xf32>
    %42 = vector.shape_cast %41 : vector<1x8x32xf32> to vector<8x32xf32>
    %43 = vector.shape_cast %40 : vector<8x32xf32> to vector<1x8x32xf32>
    tpu.vector_store %arg4[%c3_36, %c0_37, %c0_38], %43 {strides = array<i32>} : memref<8x8x32xf32, #tpu.memory_space<vmem>>, vector<1x8x32xf32>,
    %c4 = arith.constant 4 : index
    %c0_39 = arith.constant 0 : index
    %c0_40 = arith.constant 0 : index
    %44 = vector.load %arg1[%c4, %c0_39, %c0_40] : memref<8x8x16xf32, #tpu.memory_space<vmem>>, vector<1x8x16xf32>
    %45 = vector.shape_cast %44 : vector<1x8x16xf32> to vector<8x16xf32>
    %46 = arith.truncf %45 : vector<8x16xf32> to vector<8x16xbf16>
    %c0_41 = arith.constant 0 : index
    %c0_42 = arith.constant 0 : index
    %47 = vector.load %arg2[%c0_41, %c0_42] : memref<16x32xbf16, #tpu.memory_space<vmem>>, vector<16x32xbf16>
    %cst_43 = arith.constant dense<0.000000e+00> : vector<8x32xf32>
    %48 = tpu.matmul %46, %47, %cst_43 {dimension_numbers = #tpu.dot_dimension_numbers<[1], [0], [0], [1], [0, 0, 1, 1], [], []>} : vector<8x16xbf16>, vector<16x32xbf16>, vector<8x32xf32> -> vector<8x32xf32>
    %c0_44 = arith.constant 0 : index
    %c0_45 = arith.constant 0 : index
    %49 = vector.load %arg3[%c0_44, %c0_45] : memref<1x32xf32, #tpu.memory_space<vmem>>, vector<1x32xf32>
    %50 = vector.broadcast %49 : vector<1x32xf32> to vector<8x32xf32>
    %51 = arith.addf %48, %50 : vector<8x32xf32>
    %c4_46 = arith.constant 4 : index
    %c0_47 = arith.constant 0 : index
    %c0_48 = arith.constant 0 : index
    %52 = vector.load %arg4[%c4_46, %c0_47, %c0_48] : memref<8x8x32xf32, #tpu.memory_space<vmem>>, vector<1x8x32xf32>
    %53 = vector.shape_cast %52 : vector<1x8x32xf32> to vector<8x32xf32>
    %54 = vector.shape_cast %51 : vector<8x32xf32> to vector<1x8x32xf32>
    tpu.vector_store %arg4[%c4_46, %c0_47, %c0_48], %54 {strides = array<i32>} : memref<8x8x32xf32, #tpu.memory_space<vmem>>, vector<1x8x32xf32>,
    %c5 = arith.constant 5 : index
    %c0_49 = arith.constant 0 : index
    %c0_50 = arith.constant 0 : index
    %55 = vector.load %arg1[%c5, %c0_49, %c0_50] : memref<8x8x16xf32, #tpu.memory_space<vmem>>, vector<1x8x16xf32>
    %56 = vector.shape_cast %55 : vector<1x8x16xf32> to vector<8x16xf32>
    %57 = arith.truncf %56 : vector<8x16xf32> to vector<8x16xbf16>
    %c0_51 = arith.constant 0 : index
    %c0_52 = arith.constant 0 : index
    %58 = vector.load %arg2[%c0_51, %c0_52] : memref<16x32xbf16, #tpu.memory_space<vmem>>, vector<16x32xbf16>
    %cst_53 = arith.constant dense<0.000000e+00> : vector<8x32xf32>
    %59 = tpu.matmul %57, %58, %cst_53 {dimension_numbers = #tpu.dot_dimension_numbers<[1], [0], [0], [1], [0, 0, 1, 1], [], []>} : vector<8x16xbf16>, vector<16x32xbf16>, vector<8x32xf32> -> vector<8x32xf32>
    %c0_54 = arith.constant 0 : index
    %c0_55 = arith.constant 0 : index
    %60 = vector.load %arg3[%c0_54, %c0_55] : memref<1x32xf32, #tpu.memory_space<vmem>>, vector<1x32xf32>
    %61 = vector.broadcast %60 : vector<1x32xf32> to vector<8x32xf32>
    %62 = arith.addf %59, %61 : vector<8x32xf32>
    %c5_56 = arith.constant 5 : index
    %c0_57 = arith.constant 0 : index
    %c0_58 = arith.constant 0 : index
    %63 = vector.load %arg4[%c5_56, %c0_57, %c0_58] : memref<8x8x32xf32, #tpu.memory_space<vmem>>, vector<1x8x32xf32>
    %64 = vector.shape_cast %63 : vector<1x8x32xf32> to vector<8x32xf32>
    %65 = vector.shape_cast %62 : vector<8x32xf32> to vector<1x8x32xf32>
    tpu.vector_store %arg4[%c5_56, %c0_57, %c0_58], %65 {strides = array<i32>} : memref<8x8x32xf32, #tpu.memory_space<vmem>>, vector<1x8x32xf32>,
    %c6 = arith.constant 6 : index
    %c0_59 = arith.constant 0 : index
    %c0_60 = arith.constant 0 : index
    %66 = vector.load %arg1[%c6, %c0_59, %c0_60] : memref<8x8x16xf32, #tpu.memory_space<vmem>>, vector<1x8x16xf32>
    %67 = vector.shape_cast %66 : vector<1x8x16xf32> to vector<8x16xf32>
    %68 = arith.truncf %67 : vector<8x16xf32> to vector<8x16xbf16>
    %c0_61 = arith.constant 0 : index
    %c0_62 = arith.constant 0 : index
    %69 = vector.load %arg2[%c0_61, %c0_62] : memref<16x32xbf16, #tpu.memory_space<vmem>>, vector<16x32xbf16>
    %cst_63 = arith.constant dense<0.000000e+00> : vector<8x32xf32>
    %70 = tpu.matmul %68, %69, %cst_63 {dimension_numbers = #tpu.dot_dimension_numbers<[1], [0], [0], [1], [0, 0, 1, 1], [], []>} : vector<8x16xbf16>, vector<16x32xbf16>, vector<8x32xf32> -> vector<8x32xf32>
    %c0_64 = arith.constant 0 : index
    %c0_65 = arith.constant 0 : index
    %71 = vector.load %arg3[%c0_64, %c0_65] : memref<1x32xf32, #tpu.memory_space<vmem>>, vector<1x32xf32>
    %72 = vector.broadcast %71 : vector<1x32xf32> to vector<8x32xf32>
    %73 = arith.addf %70, %72 : vector<8x32xf32>
    %c6_66 = arith.constant 6 : index
    %c0_67 = arith.constant 0 : index
    %c0_68 = arith.constant 0 : index
    %74 = vector.load %arg4[%c6_66, %c0_67, %c0_68] : memref<8x8x32xf32, #tpu.memory_space<vmem>>, vector<1x8x32xf32>
    %75 = vector.shape_cast %74 : vector<1x8x32xf32> to vector<8x32xf32>
    %76 = vector.shape_cast %73 : vector<8x32xf32> to vector<1x8x32xf32>
    tpu.vector_store %arg4[%c6_66, %c0_67, %c0_68], %76 {strides = array<i32>} : memref<8x8x32xf32, #tpu.memory_space<vmem>>, vector<1x8x32xf32>,
    %c7 = arith.constant 7 : index
    %c0_69 = arith.constant 0 : index
    %c0_70 = arith.constant 0 : index
    %77 = vector.load %arg1[%c7, %c0_69, %c0_70] : memref<8x8x16xf32, #tpu.memory_space<vmem>>, vector<1x8x16xf32>
    %78 = vector.shape_cast %77 : vector<1x8x16xf32> to vector<8x16xf32>
    %79 = arith.truncf %78 : vector<8x16xf32> to vector<8x16xbf16>
    %c0_71 = arith.constant 0 : index
    %c0_72 = arith.constant 0 : index
    %80 = vector.load %arg2[%c0_71, %c0_72] : memref<16x32xbf16, #tpu.memory_space<vmem>>, vector<16x32xbf16>
    %cst_73 = arith.constant dense<0.000000e+00> : vector<8x32xf32>
    %81 = tpu.matmul %79, %80, %cst_73 {dimension_numbers = #tpu.dot_dimension_numbers<[1], [0], [0], [1], [0, 0, 1, 1], [], []>} : vector<8x16xbf16>, vector<16x32xbf16>, vector<8x32xf32> -> vector<8x32xf32>
    %c0_74 = arith.constant 0 : index
    %c0_75 = arith.constant 0 : index
    %82 = vector.load %arg3[%c0_74, %c0_75] : memref<1x32xf32, #tpu.memory_space<vmem>>, vector<1x32xf32>
    %83 = vector.broadcast %82 : vector<1x32xf32> to vector<8x32xf32>
    %84 = arith.addf %81, %83 : vector<8x32xf32>
    %c7_76 = arith.constant 7 : index
    %c0_77 = arith.constant 0 : index
    %c0_78 = arith.constant 0 : index
    %85 = vector.load %arg4[%c7_76, %c0_77, %c0_78] : memref<8x8x32xf32, #tpu.memory_space<vmem>>, vector<1x8x32xf32>
    %86 = vector.shape_cast %85 : vector<1x8x32xf32> to vector<8x32xf32>
    %87 = vector.shape_cast %84 : vector<8x32xf32> to vector<1x8x32xf32>
    tpu.vector_store %arg4[%c7_76, %c0_77, %c0_78], %87 {strides = array<i32>} : memref<8x8x32xf32, #tpu.memory_space<vmem>>, vector<1x8x32xf32>,
    %c0_79 = arith.constant 0 : index
    %c0_80 = arith.constant 0 : index
    %c0_81 = arith.constant 0 : index
    %88 = vector.load %arg4[%c0_79, %c0_80, %c0_81] : memref<8x8x32xf32, #tpu.memory_space<vmem>>, vector<8x8x32xf32>
    %cst_82 = arith.constant dense<0.000000e+00> : vector<8x32xf32>
    %89 = vector.multi_reduction <add>, %88, %cst_82 [1] : vector<8x8x32xf32> to vector<8x32xf32>
    %90 = vector.shape_cast %89 : vector<8x32xf32> to vector<8x1x32xf32>
    %cst_83 = arith.constant 8.000000e+00 : f32
    %91 = vector.broadcast %cst_83 : f32 to vector<8x1x32xf32>
    %92 = arith.divf %90, %91 : vector<8x1x32xf32>
    %93 = vector.broadcast %92 : vector<8x1x32xf32> to vector<8x8x32xf32>
    %94 = arith.subf %88, %93 : vector<8x8x32xf32>
    %95 = arith.mulf %94, %94 : vector<8x8x32xf32>
    %cst_84 = arith.constant dense<0.000000e+00> : vector<8x32xf32>
    %96 = vector.multi_reduction <add>, %95, %cst_84 [1] : vector<8x8x32xf32> to vector<8x32xf32>
    %97 = vector.shape_cast %96 : vector<8x32xf32> to vector<8x1x32xf32>
    %cst_85 = arith.constant 7.000000e+00 : f32
    %98 = vector.broadcast %cst_85 : f32 to vector<8x1x32xf32>
    %99 = arith.divf %97, %98 : vector<8x1x32xf32>
    %cst_86 = arith.constant 9.99999993E-9 : f32
    %100 = vector.broadcast %cst_86 : f32 to vector<8x1x32xf32>
    %101 = arith.addf %99, %100 : vector<8x1x32xf32>
    %102 = math.rsqrt %101 : vector<8x1x32xf32>
    %103 = vector.broadcast %102 : vector<8x1x32xf32> to vector<8x8x32xf32>
    %104 = arith.mulf %94, %103 : vector<8x8x32xf32>
    %c0_87 = arith.constant 0 : index
    %c0_88 = arith.constant 0 : index
    %c0_89 = arith.constant 0 : index
    %105 = vector.load %arg4[%c0_87, %c0_88, %c0_89] : memref<8x8x32xf32, #tpu.memory_space<vmem>>, vector<8x8x32xf32>
    tpu.vector_store %arg4[%c0_87, %c0_88, %c0_89], %104 {strides = array<i32>} : memref<8x8x32xf32, #tpu.memory_space<vmem>>, vector<8x8x32xf32>,
    return
  }
  func.func @transform_0(%arg0: i32) -> (i32, i32, i32) {
    %c0_i32 = arith.constant 0 : i32
    %c0_i32_0 = arith.constant 0 : i32
    %c0_i32_1 = arith.constant 0 : i32
    return %arg0, %c0_i32, %c0_i32_0 : i32, i32, i32
  }
  func.func @transform_1(%arg0: i32) -> (i32, i32) {
    %c0_i32 = arith.constant 0 : i32
    %c0_i32_0 = arith.constant 0 : i32
    %c0_i32_1 = arith.constant 0 : i32
    return %c0_i32, %c0_i32_0 : i32, i32
  }
  func.func @transform_2(%arg0: i32) -> (i32, i32) {
    %c0_i32 = arith.constant 0 : i32
    %c0_i32_0 = arith.constant 0 : i32
    %c0_i32_1 = arith.constant 0 : i32
    return %c0_i32, %c0_i32_0 : i32, i32
  }
  func.func @transform_3(%arg0: i32) -> (i32, i32, i32) {
    %c0_i32 = arith.constant 0 : i32
    %c0_i32_0 = arith.constant 0 : i32
    %c0_i32_1 = arith.constant 0 : i32
    return %arg0, %c0_i32, %c0_i32_0 : i32, i32, i32
  }
}

</mosaic_0001>

<bundles_post_ra>
// kernel: tpu_custom_call.1
= control target key start
LH: loop header
LB: loop body
LE: loop exit
PB: predicated region body
PF: predicated region fallthrough
CT: control target
= control target key end

     0   :  { %8 = vsyncpa [#allocation3], 0  ;;  %s1136_s0 = inlined_call_operand.hbm [shape: f32[8,8,16], index: 0, kind: input, shape index: {}]   ;;  %s1137_s1 = inlined_call_operand.hbm [shape: bf16[16,32], index: 1, kind: input, shape index: {}]   ;;  %s1138_s2 = inlined_call_operand.vmem [shape: f32[1,32], index: 2, kind: input, shape index: {}]   ;;  %s1139_s3 = inlined_call_operand.hbm [shape: f32[8,8,32], index: 3, kind: output, shape index: {}]  }
   0x1   :  { %9 = vsyncpa [#allocation6], 0 }
   0x2   :  { %10 = vsyncpa [#allocation4], 0  ;;  %s945_s12 = smov [#allocation2]   ;;  %s873_s16 = scalar_lea.hbm %s1136_s0, 1024 }
   0x3   :  { %s16_s13 = sshll.u32 %s945_s12, 4  ;;  %p874_p0 = scmp.ne.s32.totalorder %s1136_s0, %s873_s16  ;;  %s17_s13 = int_to_ptr.vmem [resolvable:$true] %s16_s13 }
   0x4   :  { %p877_p1 = scmp.lt.u32.totalorder %s873_s16, %s1136_s0 }
   0x6   :  { %p879_p2 = pnand %p877_p1, %p874_p0 }
   0x8   :  { %882 = shalt.err (!%p879_p2)
}
   0x9   :  { %s883_s21 = scalar_lea.vmem %s17_s13, 1024  ;;  %p888_p4 = scmp.lt.s32.totalorder %s17_s13, %s17_s13 }
   0xa   :  { %p884_p3 = scmp.ne.s32.totalorder %s17_s13, %s883_s21  ;;  %p889_p5 = scmp.lt.s32.totalorder %s883_s21, %s883_s21 }
   0xc   :  { %p890_p6 = por %p889_p5, %p888_p4 }
   0xe   :  { %p891_p7 = pnand %p890_p6, %p884_p3 }
  0x10   :  { %894 = shalt.err (!%p891_p7)
}
  0x11   :  { %s946_s22 = smov 128   ;;  %s947_s23 = smov 8  }
  0x12   :  { %22 = dma.hbm_to_vmem [thread:$0]  %s1136_s0, 1024, %s17_s13, [#allocation3], %s946_s22, %s946_s22, %s947_s23  }
  0x13   :  { %s948_s26 = smov [#allocation5]   ;;  %s895_s30 = scalar_lea.hbm %s1137_s1, 128 }
  0x14   :  { %s28_s27 = sshll.u32 %s948_s26, 4  ;;  %p896_p8 = scmp.ne.s32.totalorder %s1137_s1, %s895_s30  ;;  %s29_s27 = int_to_ptr.vmem [resolvable:$true] %s28_s27 }
  0x15   :  { %p899_p9 = scmp.lt.u32.totalorder %s895_s30, %s1137_s1 }
  0x17   :  { %p901_p10 = pnand %p899_p9, %p896_p8 }
  0x19   :  { %904 = shalt.err (!%p901_p10)
}
  0x1a   :  { %s905_s8 = scalar_lea.vmem %s29_s27, 128  ;;  %p910_p12 = scmp.lt.s32.totalorder %s29_s27, %s29_s27 }
  0x1b   :  { %p906_p11 = scmp.ne.s32.totalorder %s29_s27, %s905_s8  ;;  %p911_p13 = scmp.lt.s32.totalorder %s905_s8, %s905_s8 }
  0x1d   :  { %p912_p0 = por %p911_p13, %p910_p12 }
  0x1f   :  { %p913_p1 = pnand %p912_p0, %p906_p11 }
  0x21   :  { %916 = shalt.err (!%p913_p1)
}
  0x22   :  { %s949_s0 = smov 64   ;;  %s950_s9 = smov 4  }
  0x23   :  { %34 = dma.hbm_to_vmem [thread:$0]  %s1137_s1, 128, %s29_s27, [#allocation6], %s949_s0, %s949_s0, %s950_s9  }
  0x24   :  { %939 = dma.done.wait [#allocation3], 1024  }
  0x25   :  { %940 = vsyncadd [#allocation3], 4294966272 }
  0x26   :  { %941 = dma.done.wait [#allocation6], 128  }
  0x27   :  { %942 = vsyncadd [#allocation6], 4294967168  ;;  %v951_v0 = vmov 0.0   ;;  %vm952_vm0 = vmmov 0   ;;  %v849_v1 = vld [vmem:[#allocation5] sm:$0xff]   ;;  %vm61_vm1 = vcmask 130048  }
  0x28   :  { %792 = vmatprep.subr.bf16.mxu0 %v951_v0  ;;  %798 = vmatprep.subr.bf16.mxu1 %v951_v0  ;;  %v850_v2 = vld [vmem:[#allocation5] sm:$0xff]   ;;  %v108_v4 = vld [vmem:[#allocation2 + $0x8] sm:$0xff]  ;;  %v171_v9 = vld [vmem:[#allocation2 + $0x10] sm:$0xff]  ;;  %vm105_vm2 = vcmask 261120  }
  0x29   :  { %794 = vmatprep.mubr.msk.bf16.mxu0 %vm952_vm0, %v951_v0  ;;  %800 = vmatprep.mubr.msk.bf16.mxu1 %vm952_vm0, %v951_v0  ;;  %v44_v3 = vld [vmem:[#allocation2] sm:$0xff]  ;;  %v109_v6 = vpack.c.bf16 %v108_v4, %v108_v4  ;;  %v234_v10 = vld [vmem:[#allocation2 + $0x18] sm:$0xff]  ;;  %v172_v11 = vpack.c.bf16 %v171_v9, %v171_v9  ;;  %v360_v16 = vld [vmem:[#allocation2 + $0x28] sm:$0xff] }
  0x2a   :  { %793 = vmatpush3.bf16.msra.mxu0 %v849_v1  ;;  %799 = vmatpush3.bf16.msra.mxu1 %v850_v2  ;;  %v45_v5 = vpack.c.bf16 %v44_v3, %v44_v3  ;;  %v851_v7 = vld [vmem:[#allocation5] sm:$0xff]   ;;  %v235_v12 = vpack.c.bf16 %v234_v10, %v234_v10  ;;  %v361_v18 = vpack.c.bf16 %v360_v16, %v360_v16  ;;  %v423_v21 = vld [vmem:[#allocation2 + $0x30] sm:$0xff]  ;;  %v486_v22 = vld [vmem:[#allocation2 + $0x38] sm:$0xff] }
  0x2b   :  { %804 = vmatprep.subr.bf16.mxu0 %v951_v0  ;;  %810 = vmatprep.subr.bf16.mxu1 %v951_v0  ;;  %v852_v8 = vld [vmem:[#allocation5] sm:$0xff]   ;;  %v424_v23 = vpack.c.bf16 %v423_v21, %v423_v21  ;;  %v487_v24 = vpack.c.bf16 %v486_v22, %v486_v22 }
  0x2c   :  { %v853_v13 = vld [vmem:[#allocation5] sm:$0xff]  }
  0x2d   :  { %795 = vmatmul.mubr.msk.bf16.vlgmr.msra.gmra.mrb[0].mxu0 %vm61_vm1, %v45_v5  ;;  %801 = vmatmul.mubr.msk.bf16.vlgmr.msra.gmra.mrb[0].mxu1 %vm61_vm1, %v109_v6  ;;  %v854_v14 = vld [vmem:[#allocation5] sm:$0xff]  }
  0x2e   :  { %805 = vmatpush3.bf16.msra.mxu0 %v851_v7  ;;  %811 = vmatpush3.bf16.msra.mxu1 %v852_v8  ;;  %v297_v15 = vld [vmem:[#allocation2 + $0x20] sm:$0xff] }
  0x2f   :  { %806 = vmatprep.mubr.msk.bf16.mxu0 %vm952_vm0, %v951_v0  ;;  %812 = vmatprep.mubr.msk.bf16.mxu1 %vm952_vm0, %v951_v0  ;;  %v298_v17 = vpack.c.bf16 %v297_v15, %v297_v15  ;;  %v855_v19 = vld [vmem:[#allocation5] sm:$0xff]  }
  0x30   :  { %816 = vmatprep.subr.bf16.mxu0 %v951_v0  ;;  %822 = vmatprep.subr.bf16.mxu1 %v951_v0  ;;  %v856_v20 = vld [vmem:[#allocation5] sm:$0xff]  }
  0x31   :  { %v1020_v25 = vld [vmem:[%s1138_s2] ss:$0 sm:$0xff]  ;;  %s953_s2 = smov [#allocation7]  }
  0x32   :  { %s739_s13 = sshll.u32 %s953_s2, 4  ;;  %s740_s13 = int_to_ptr.vmem [resolvable:$true] %s739_s13 }
  0x33   :  { %s917_s14 = scalar_lea.vmem %s740_s13, 1024  ;;  %p922_p3 = scmp.lt.s32.totalorder %s740_s13, %s740_s13 }
  0x34   :  { %p918_p2 = scmp.ne.s32.totalorder %s740_s13, %s917_s14  ;;  %p923_p4 = scmp.lt.s32.totalorder %s917_s14, %s917_s14 }
  0x35   :  { %807 = vmatmul.mubr.msk.bf16.vlgmr.msra.gmra.mrb[4].mxu0 %vm61_vm1, %v172_v11  ;;  %813 = vmatmul.mubr.msk.bf16.vlgmr.msra.gmra.mrb[4].mxu1 %vm61_vm1, %v235_v12 }
  0x36   :  { %817 = vmatpush3.bf16.msra.mxu0 %v853_v13  ;;  %823 = vmatpush3.bf16.msra.mxu1 %v854_v14  ;;  %p924_p5 = por %p923_p4, %p922_p3 }
  0x37   :  { %818 = vmatprep.mubr.msk.bf16.mxu0 %vm952_vm0, %v951_v0  ;;  %824 = vmatprep.mubr.msk.bf16.mxu1 %vm952_vm0, %v951_v0 }
  0x38   :  { %828 = vmatprep.subr.bf16.mxu0 %v951_v0  ;;  %834 = vmatprep.subr.bf16.mxu1 %v951_v0  ;;  %p925_p6 = pnand %p924_p5, %p918_p2 }
  0x3d   :  { %819 = vmatmul.mubr.msk.bf16.vlgmr.msra.gmra.mrb[8].mxu0 %vm61_vm1, %v298_v17  ;;  %825 = vmatmul.mubr.msk.bf16.vlgmr.msra.gmra.mrb[8].mxu1 %vm61_vm1, %v361_v18 }
  0x3e   :  { %829 = vmatpush3.bf16.msra.mxu0 %v855_v19  ;;  %835 = vmatpush3.bf16.msra.mxu1 %v856_v20 }
  0x3f   :  { %830 = vmatprep.mubr.msk.bf16.mxu0 %vm952_vm0, %v951_v0  ;;  %836 = vmatprep.mubr.msk.bf16.mxu1 %vm952_vm0, %v951_v0 }
  0x45   :  { %831 = vmatmul.mubr.msk.bf16.vlgmr.msra.gmra.mrb[12].mxu0 %vm61_vm1, %v424_v23  ;;  %837 = vmatmul.mubr.msk.bf16.vlgmr.msra.gmra.mrb[12].mxu1 %vm61_vm1, %v487_v24 }
 0x100   :  { %v99_v26 = vpop.f32.mrb[0].mxu0  ;;  %v162_v28 = vpop.f32.mrb[0].mxu1 }
 0x101   :  { %v100_v27 = vadd.f32 %v1020_v25, %v99_v26  ;;  %v796_v29 = vpop.f32.mrb[1].mxu0  ;;  %v163_v30 = vadd.f32 %v1020_v25, %v162_v28  ;;  %v802_v31 = vpop.f32.mrb[1].mxu1 }
 0x102   :  { %v102_v32 = vpop.f32.mrb[2].mxu0  ;;  %v165_v33 = vpop.f32.mrb[2].mxu1 }
 0x103   :  { %106 = vst.msk [vmem:[#allocation7] sm:$0xff] %vm105_vm2, %v100_v27  ;;  %v797_v34 = vpop.f32.mrb[3].mxu0  ;;  %169 = vst.msk [vmem:[#allocation7 + $0x8] sm:$0xff] %vm105_vm2, %v163_v30  ;;  %v803_v35 = vpop.f32.mrb[3].mxu1 }
 0x108   :  { %v225_v36 = vpop.f32.mrb[4].mxu0  ;;  %v288_v38 = vpop.f32.mrb[4].mxu1 }
 0x109   :  { %v226_v37 = vadd.f32 %v1020_v25, %v225_v36  ;;  %v808_v39 = vpop.f32.mrb[5].mxu0  ;;  %v289_v41 = vadd.f32 %v1020_v25, %v288_v38  ;;  %v814_v42 = vpop.f32.mrb[5].mxu1 }
 0x10a   :  { %v548_v40 = vld [vmem:[#allocation7] sm:$0xff]  ;;  %v228_v43 = vpop.f32.mrb[6].mxu0  ;;  %v549_v45 = vld [vmem:[#allocation7 + $0x8] sm:$0xff]  ;;  %v291_v46 = vpop.f32.mrb[6].mxu1 }
 0x10b   :  { %v556_v44 = vsel %vm105_vm2, %v548_v40, 0.0  ;;  %232 = vst.msk [vmem:[#allocation7 + $0x10] sm:$0xff] %vm105_vm2, %v226_v37  ;;  %v809_v47 = vpop.f32.mrb[7].mxu0  ;;  %v563_v49 = vsel %vm105_vm2, %v549_v45, 0.0  ;;  %295 = vst.msk [vmem:[#allocation7 + $0x18] sm:$0xff] %vm105_vm2, %v289_v41  ;;  %v815_v50 = vpop.f32.mrb[7].mxu1 }
 0x10c   :  { %v557_v48 = vrot.slane %v556_v44, 4  ;;  %v564_v51 = vrot.slane %v563_v49, 4 }
 0x10e   :  { %v558_v52 = vadd.f32 %v557_v48, %v556_v44  ;;  %v565_v53 = vadd.f32 %v564_v51, %v563_v49 }
 0x110   :  { %v559_v54 = vrot.slane %v558_v52, 2  ;;  %v351_v55 = vpop.f32.mrb[8].mxu0  ;;  %v566_v56 = vrot.slane %v565_v53, 2  ;;  %v414_v58 = vpop.f32.mrb[8].mxu1 }
 0x111   :  { %v352_v57 = vadd.f32 %v1020_v25, %v351_v55  ;;  %v820_v59 = vpop.f32.mrb[9].mxu0  ;;  %v415_v62 = vadd.f32 %v1020_v25, %v414_v58  ;;  %v826_v63 = vpop.f32.mrb[9].mxu1 }
 0x112   :  { %v560_v60 = vadd.f32 %v559_v54, %v558_v52  ;;  %v1033_v61 = vld [vmem:[#allocation7 + $0x10] sm:$0xff]  ;;  %v354_v0 = vpop.f32.mrb[10].mxu0  ;;  %v567_v1 = vadd.f32 %v566_v56, %v565_v53  ;;  %v1038_v3 = vld [vmem:[#allocation7 + $0x18] sm:$0xff]  ;;  %v417_v4 = vpop.f32.mrb[10].mxu1 }
 0x113   :  { %v570_v2 = vsel %vm105_vm2, %v1033_v61, 0.0  ;;  %358 = vst.msk [vmem:[#allocation7 + $0x20] sm:$0xff] %vm105_vm2, %v352_v57  ;;  %v821_v5 = vpop.f32.mrb[11].mxu0  ;;  %v577_v8 = vsel %vm105_vm2, %v1038_v3, 0.0  ;;  %421 = vst.msk [vmem:[#allocation7 + $0x28] sm:$0xff] %vm105_vm2, %v415_v62  ;;  %v827_v9 = vpop.f32.mrb[11].mxu1 }
 0x114   :  { %v561_v6 = vrot.slane %v560_v60, 1  ;;  %v571_v7 = vrot.slane %v570_v2, 4  ;;  %v568_v10 = vrot.slane %v567_v1, 1  ;;  %v578_v11 = vrot.slane %v577_v8, 4 }
 0x116   :  { %v562_v12 = vadd.f32 %v561_v6, %v560_v60  ;;  %v572_v13 = vadd.f32 %v571_v7, %v570_v2  ;;  %v569_v14 = vadd.f32 %v568_v10, %v567_v1  ;;  %v579_v15 = vadd.f32 %v578_v11, %v577_v8 }
 0x118   :  { %v613_v16 = vmul.f32 0.125, %v562_v12  ;;  %v573_v17 = vrot.slane %v572_v13, 2  ;;  %v477_v18 = vpop.f32.mrb[12].mxu0  ;;  %v614_v19 = vmul.f32 0.125, %v569_v14  ;;  %v580_v20 = vrot.slane %v579_v15, 2  ;;  %v540_v22 = vpop.f32.mrb[12].mxu1 }
 0x119   :  { %v478_v21 = vadd.f32 %v1020_v25, %v477_v18  ;;  %v832_v23 = vpop.f32.mrb[13].mxu0  ;;  %v541_v28 = vadd.f32 %v1020_v25, %v540_v22  ;;  %v838_v29 = vpop.f32.mrb[13].mxu1 }
 0x11a   :  { %v1045_v24 = vsub.f32 %v548_v40, %v613_v16  ;;  %v574_v26 = vadd.f32 %v573_v17, %v572_v13  ;;  %v1047_v27 = vld [vmem:[#allocation7 + $0x20] sm:$0xff]  ;;  %v480_v30 = vpop.f32.mrb[14].mxu0  ;;  %v1050_v31 = vsub.f32 %v549_v45, %v614_v19  ;;  %v581_v32 = vadd.f32 %v580_v20, %v579_v15  ;;  %v1054_v34 = vld [vmem:[#allocation7 + $0x28] sm:$0xff]  ;;  %v543_v35 = vpop.f32.mrb[14].mxu1 }
 0x11b   :  { %v584_v33 = vsel %vm105_vm2, %v1047_v27, 0.0  ;;  %484 = vst.msk [vmem:[#allocation7 + $0x30] sm:$0xff] %vm105_vm2, %v478_v21  ;;  %v833_v36 = vpop.f32.mrb[15].mxu0  ;;  %v591_v25 = vsel %vm105_vm2, %v1054_v34, 0.0  ;;  %547 = vst.msk [vmem:[#allocation7 + $0x38] sm:$0xff] %vm105_vm2, %v541_v28  ;;  %v839_v40 = vpop.f32.mrb[15].mxu1 }
 0x11c   :  { %v629_v37 = vmul.f32 %v1045_v24, %v1045_v24  ;;  %v575_v38 = vrot.slane %v574_v26, 1  ;;  %v585_v39 = vrot.slane %v584_v33, 4  ;;  %v630_v41 = vmul.f32 %v1050_v31, %v1050_v31 }
 0x11d   :  { %v582_v42 = vrot.slane %v581_v32, 1  ;;  %v592_v43 = vrot.slane %v591_v25, 4 }
 0x11e   :  { %v637_v44 = vsel %vm105_vm2, %v629_v37, 0.0  ;;  %v576_v45 = vadd.f32 %v575_v38, %v574_v26  ;;  %v586_v46 = vadd.f32 %v585_v39, %v584_v33  ;;  %v644_v48 = vsel %vm105_vm2, %v630_v41, 0.0 }
 0x11f   :  { %v638_v47 = vrot.slane %v637_v44, 4  ;;  %v583_v49 = vadd.f32 %v582_v42, %v581_v32  ;;  %v593_v50 = vadd.f32 %v592_v43, %v591_v25  ;;  %v645_v51 = vrot.slane %v644_v48, 4 }
 0x120   :  { %v615_v52 = vmul.f32 0.125, %v576_v45  ;;  %v587_v53 = vrot.slane %v586_v46, 2 }
 0x121   :  { %v639_v54 = vadd.f32 %v638_v47, %v637_v44  ;;  %v616_v55 = vmul.f32 0.125, %v583_v49  ;;  %v594_v56 = vrot.slane %v593_v50, 2  ;;  %v646_v57 = vadd.f32 %v645_v51, %v644_v48 }
 0x122   :  { %v1067_v58 = vsub.f32 %v1033_v61, %v615_v52  ;;  %v588_v59 = vadd.f32 %v587_v53, %v586_v46  ;;  %v1069_v60 = vld [vmem:[#allocation7 + $0x30] sm:$0xff]  ;;  %v1076_v2 = vld [vmem:[#allocation7 + $0x38] sm:$0xff] }
 0x123   :  { %v640_v62 = vrot.slane %v639_v54, 2  ;;  %v1072_v63 = vsub.f32 %v1038_v3, %v616_v55  ;;  %v595_v0 = vadd.f32 %v594_v56, %v593_v50  ;;  %v598_v1 = vsel %vm105_vm2, %v1069_v60, 0.0 }
 0x124   :  { %v647_v4 = vrot.slane %v646_v57, 2  ;;  %v631_v5 = vmul.f32 %v1067_v58, %v1067_v58  ;;  %v589_v6 = vrot.slane %v588_v59, 1  ;;  %v599_v61 = vrot.slane %v598_v1, 4 }
 0x125   :  { %v641_v7 = vadd.f32 %v640_v62, %v639_v54  ;;  %v632_v8 = vmul.f32 %v1072_v63, %v1072_v63  ;;  %v596_v9 = vrot.slane %v595_v0, 1  ;;  %v605_v3 = vsel %vm105_vm2, %v1076_v2, 0.0 }
 0x126   :  { %v648_v10 = vadd.f32 %v647_v4, %v646_v57  ;;  %v651_v11 = vsel %vm105_vm2, %v631_v5, 0.0  ;;  %v590_v12 = vadd.f32 %v589_v6, %v588_v59  ;;  %v600_v13 = vadd.f32 %v599_v61, %v598_v1 }
 0x127   :  { %v642_v14 = vrot.slane %v641_v7, 1  ;;  %v652_v15 = vrot.slane %v651_v11, 4  ;;  %v658_v16 = vsel %vm105_vm2, %v632_v8, 0.0  ;;  %v597_v17 = vadd.f32 %v596_v9, %v595_v0 }
 0x128   :  { %v649_v18 = vrot.slane %v648_v10, 1  ;;  %v659_v19 = vrot.slane %v658_v16, 4  ;;  %v617_v20 = vmul.f32 0.125, %v590_v12  ;;  %v601_v21 = vrot.slane %v600_v13, 2 }
 0x129   :  { %v643_v22 = vadd.f32 %v642_v14, %v641_v7  ;;  %v653_v23 = vadd.f32 %v652_v15, %v651_v11  ;;  %v618_v26 = vmul.f32 0.125, %v597_v17  ;;  %v606_v28 = vrot.slane %v605_v3, 4 }
 0x12a   :  { %v650_v29 = vadd.f32 %v649_v18, %v648_v10  ;;  %v660_v30 = vadd.f32 %v659_v19, %v658_v16  ;;  %v1087_v32 = vsub.f32 %v1047_v27, %v617_v20  ;;  %v602_v33 = vadd.f32 %v601_v21, %v600_v13 }
 0x12b   :  { %v694_v35 = vmul.f32 0.14285715, %v643_v22  ;;  %v654_v36 = vrot.slane %v653_v23, 2  ;;  %v1090_v37 = vsub.f32 %v1054_v34, %v618_v26  ;;  %v607_v38 = vadd.f32 %v606_v28, %v605_v3 }
 0x12c   :  { %v695_v39 = vmul.f32 0.14285715, %v650_v29  ;;  %v661_v25 = vrot.slane %v660_v30, 2  ;;  %v633_v40 = vmul.f32 %v1087_v32, %v1087_v32  ;;  %v603_v41 = vrot.slane %v602_v33, 1 }
 0x12d   :  { %v702_v42 = vadd.f32 1e-08, %v694_v35  ;;  %v655_v43 = vadd.f32 %v654_v36, %v653_v23  ;;  %v634_v44 = vmul.f32 %v1090_v37, %v1090_v37  ;;  %v608_v27 = vrot.slane %v607_v38, 2 }
 0x12e   :  { %v703_v45 = vadd.f32 1e-08, %v695_v39  ;;  %v662_v46 = vadd.f32 %v661_v25, %v660_v30  ;;  %v665_v47 = vsel %vm105_vm2, %v633_v40, 0.0  ;;  %v604_v48 = vadd.f32 %v603_v41, %v602_v33 }
 0x12f   :  { %857 = vrsqrt.f32 %v702_v42  ;;  %v656_v34 = vrot.slane %v655_v43, 1  ;;  %v666_v49 = vrot.slane %v665_v47, 4  ;;  %v672_v50 = vsel %vm105_vm2, %v634_v44, 0.0 }
 0x130   :  { %859 = vrsqrt.f32 %v703_v45  ;;  %v663_v51 = vrot.slane %v662_v46, 1  ;;  %v673_v52 = vrot.slane %v672_v50, 4  ;;  %v619_v53 = vmul.f32 0.125, %v604_v48 }
 0x131   :  { %v657_v54 = vadd.f32 %v656_v34, %v655_v43  ;;  %v667_v55 = vadd.f32 %v666_v49, %v665_v47  ;;  %v609_v56 = vadd.f32 %v608_v27, %v607_v38 }
 0x132   :  { %v664_v57 = vadd.f32 %v663_v51, %v662_v46  ;;  %v674_v59 = vadd.f32 %v673_v52, %v672_v50  ;;  %v1099_v62 = vsub.f32 %v1069_v60, %v619_v53 }
 0x133   :  { %v696_v0 = vmul.f32 0.14285715, %v657_v54  ;;  %v668_v1 = vrot.slane %v667_v55, 2  ;;  %v610_v4 = vrot.slane %v609_v56, 1 }
 0x134   :  { %v697_v5 = vmul.f32 0.14285715, %v664_v57  ;;  %v675_v6 = vrot.slane %v674_v59, 2  ;;  %v635_v61 = vmul.f32 %v1099_v62, %v1099_v62 }
 0x135   :  { %v704_v7 = vadd.f32 1e-08, %v696_v0  ;;  %v669_v8 = vadd.f32 %v668_v1, %v667_v55  ;;  %v611_v9 = vadd.f32 %v610_v4, %v609_v56 }
 0x136   :  { %v705_v3 = vadd.f32 1e-08, %v697_v5  ;;  %v676_v10 = vadd.f32 %v675_v6, %v674_v59  ;;  %v679_v11 = vsel %vm105_vm2, %v635_v61, 0.0 }
 0x137   :  { %861 = vrsqrt.f32 %v704_v7  ;;  %v670_v12 = vrot.slane %v669_v8, 1  ;;  %v680_v13 = vrot.slane %v679_v11, 4  ;;  %v620_v60 = vmul.f32 0.125, %v611_v9 }
 0x138   :  { %863 = vrsqrt.f32 %v705_v3  ;;  %v677_v14 = vrot.slane %v676_v10, 1 }
 0x139   :  { %v858_v15 = vpop.eup %857  ;;  %v671_v16 = vadd.f32 %v670_v12, %v669_v8  ;;  %v681_v17 = vadd.f32 %v680_v13, %v679_v11  ;;  %v628_v18 = vsub.f32 %v1076_v2, %v620_v60 }
 0x13a   :  { %v860_v19 = vpop.eup %859  ;;  %v718_v20 = vmul.f32 %v858_v15, %v1045_v24  ;;  %v678_v21 = vadd.f32 %v677_v14, %v676_v10 }
 0x13b   :  { %v719_v22 = vmul.f32 %v860_v19, %v1050_v31  ;;  %v698_v23 = vmul.f32 0.14285715, %v671_v16  ;;  %v682_v26 = vrot.slane %v681_v17, 2  ;;  %v636_v28 = vmul.f32 %v628_v18, %v628_v18 }
 0x13c   :  { %726 = vst.msk [vmem:[#allocation7] sm:$0xff] %vm105_vm2, %v718_v20  ;;  %v699_v29 = vmul.f32 0.14285715, %v678_v21 }
 0x13d   :  { %727 = vst.msk [vmem:[#allocation7 + $0x8] sm:$0xff] %vm105_vm2, %v719_v22  ;;  %v706_v30 = vadd.f32 1e-08, %v698_v23  ;;  %v683_v33 = vadd.f32 %v682_v26, %v681_v17  ;;  %v686_v35 = vsel %vm105_vm2, %v636_v28, 0.0 }
 0x13e   :  { %v707_v36 = vadd.f32 1e-08, %v699_v29  ;;  %v687_v2 = vrot.slane %v686_v35, 4 }
 0x13f   :  { %865 = vrsqrt.f32 %v706_v30  ;;  %v684_v38 = vrot.slane %v683_v33, 1 }
 0x140   :  { %867 = vrsqrt.f32 %v707_v36  ;;  %v688_v24 = vadd.f32 %v687_v2, %v686_v35 }
 0x141   :  { %v862_v39 = vpop.eup %861  ;;  %v685_v31 = vadd.f32 %v684_v38, %v683_v33 }
 0x142   :  { %v864_v25 = vpop.eup %863  ;;  %v720_v40 = vmul.f32 %v862_v39, %v1067_v58  ;;  %v689_v41 = vrot.slane %v688_v24, 2 }
 0x143   :  { %v721_v42 = vmul.f32 %v864_v25, %v1072_v63  ;;  %v700_v43 = vmul.f32 0.14285715, %v685_v31 }
 0x144   :  { %728 = vst.msk [vmem:[#allocation7 + $0x10] sm:$0xff] %vm105_vm2, %v720_v40  ;;  %v690_v44 = vadd.f32 %v689_v41, %v688_v24 }
 0x145   :  { %729 = vst.msk [vmem:[#allocation7 + $0x18] sm:$0xff] %vm105_vm2, %v721_v42  ;;  %v708_v27 = vadd.f32 1e-08, %v700_v43 }
 0x146   :  { %v691_v45 = vrot.slane %v690_v44, 1 }
 0x147   :  { %869 = vrsqrt.f32 %v708_v27 }
 0x148   :  { %v692_v46 = vadd.f32 %v691_v45, %v690_v44 }
 0x149   :  { %v866_v47 = vpop.eup %865 }
 0x14a   :  { %v868_v48 = vpop.eup %867  ;;  %v722_v34 = vmul.f32 %v866_v47, %v1087_v32  ;;  %v701_v49 = vmul.f32 0.14285715, %v692_v46 }
 0x14b   :  { %v723_v58 = vmul.f32 %v868_v48, %v1090_v37 }
 0x14c   :  { %730 = vst.msk [vmem:[#allocation7 + $0x20] sm:$0xff] %vm105_vm2, %v722_v34  ;;  %v709_v63 = vadd.f32 1e-08, %v701_v49 }
 0x14d   :  { %731 = vst.msk [vmem:[#allocation7 + $0x28] sm:$0xff] %vm105_vm2, %v723_v58 }
 0x14e   :  { %871 = vrsqrt.f32 %v709_v63 }
 0x151   :  { %v870_v50 = vpop.eup %869 }
 0x152   :  { %v724_v51 = vmul.f32 %v870_v50, %v1099_v62 }
 0x154   :  { %732 = vst.msk [vmem:[#allocation7 + $0x30] sm:$0xff] %vm105_vm2, %v724_v51 }
 0x158   :  { %v872_v52 = vpop.eup %871 }
 0x159   :  { %v725_v53 = vmul.f32 %v872_v52, %v628_v18 }
 0x15b   :  { %733 = vst.msk [vmem:[#allocation7 + $0x38] sm:$0xff] %vm105_vm2, %v725_v53 }
 0x15c   :  { %928 = shalt.err (!%p925_p6)
}
 0x15d   :  { %s929_s17 = scalar_lea.hbm %s1139_s3, 1024 }
 0x15e   :  { %p930_p7 = scmp.ne.s32.totalorder %s1139_s3, %s929_s17  ;;  %p933_p8 = scmp.lt.u32.totalorder %s929_s17, %s1139_s3 }
 0x160   :  { %p935_p9 = pnand %p933_p8, %p930_p7 }
 0x162   :  { %938 = shalt.err (!%p935_p9)
}
 0x163   :  { %745 = dma.vmem_to_hbm [thread:$0]  %s740_s13, 1024, %s1139_s3, [#allocation4], %s946_s22, %s946_s22, %s947_s23  }
 0x164   :  { %943 = dma.done.wait [#allocation4], 1024  }
 0x165   :  { %944 = vsyncadd [#allocation4], 4294966272 }
 0x166   :  { %749 = vsyncpa [#allocation3], 1 }
 0x167   :  { %750 = vsyncpa [#allocation6], 1 }
 0x168   :  { %751 = vsyncpa [#allocation4], 1 }

</bundles_post_ra>
